<compile_context>
chip_gen: v5e
topology: v5e:2x2
jax: 0.10.0
libtpu: 0.0.40
codegen_flags: <defaults>
</compile_context>

<pallas_src>
import functools

import jax
import jax.numpy as jnp
from jax.experimental import pallas as pl
from jax.experimental.pallas import tpu as pltpu

MASK_VAL = 255


def _masked_ce_kernel(logits_ref, target_ref, sum_ref, cnt_ref, *,
                      tile_s, spatial, mask_val):
    s_idx = pl.program_id(1)

    @pl.when(s_idx == 0)
    def _():
        sum_ref[...] = jnp.zeros_like(sum_ref)
        cnt_ref[...] = jnp.zeros_like(cnt_ref)

    x = logits_ref[...].astype(jnp.float32)        # (1, C, TS)  classes on sublanes
    tgt = target_ref[...]                          # (1, 1, TS)  int32

    # Validity: real label AND inside the true spatial extent (tail tile).
    valid = tgt != mask_val                        # (1, 1, TS) bool
    if spatial % tile_s != 0:                      # compile-time branch
        lane = jax.lax.broadcasted_iota(jnp.int32, tgt.shape, 2)
        in_bounds = (s_idx * tile_s + lane) < spatial
        valid = jnp.logical_and(valid, in_bounds)
    t_eff = jnp.where(valid, tgt, 0)               # masked/garbage -> class 0

    # Numerically-stable log-sum-exp over the class (sublane) axis, per lane.
    m = jnp.max(x, axis=1, keepdims=True)                       # (1, 1, TS)
    e = jnp.exp(x - m)                                          # (1, C, TS)
    lse = m + jnp.log(jnp.sum(e, axis=1, keepdims=True))        # (1, 1, TS)

    # Gather the target-class logit via compare+select (pure VPU), sum classes.
    cls = jax.lax.broadcasted_iota(jnp.int32, x.shape, 1)       # (1, C, TS)
    logit_t = jnp.sum(jnp.where(cls == t_eff, x, 0.0),
                      axis=1, keepdims=True)                    # (1, 1, TS)

    loss = jnp.where(valid, lse - logit_t, 0.0)                 # (1, 1, TS)

    # Lane-wide accumulators resident across the spatial grid axis.
    sum_ref[...] += loss
    cnt_ref[...] += valid.astype(jnp.int32)


def _pick_tile_s(spatial, num_classes, itemsize, target_block_bytes):
    """Spatial tile (lane axis) sizing: ~target_block_bytes per logits block,
    multiple of 128 lanes (or the full extent when spatial is tiny)."""
    if spatial <= 128:
        return spatial
    ts = (target_block_bytes // (num_classes * itemsize)) // 128 * 128
    ts = max(128, ts)
    ts = min(ts, ((spatial + 127) // 128) * 128)
    return ts


def masked_cross_entropy_loss(logits_nchw, target_nhw, *, mask_val=MASK_VAL,
                              target_block_bytes=1 << 20):
    """Equivalent of MaskedCrossEntropyLoss(mask_val=255).forward(input, target)."""
    n, c, h, w = logits_nchw.shape
    s = h * w

    # Free reshapes only (contiguous-dim merges): no transpose, no padding copy.
    logits_ncs = logits_nchw.reshape(n, c, s)
    target_n1s = target_nhw.reshape(n, 1, s).astype(jnp.int32)

    itemsize = jnp.dtype(logits_nchw.dtype).itemsize
    ts = _pick_tile_s(s, c, itemsize, target_block_bytes)
    n_s_tiles = pl.cdiv(s, ts)

    kernel = functools.partial(_masked_ce_kernel,
                               tile_s=ts, spatial=s, mask_val=mask_val)

    sum_out, cnt_out = pl.pallas_call(
        kernel,
        out_shape=(
            jax.ShapeDtypeStruct((n, 1, ts), jnp.float32),
            jax.ShapeDtypeStruct((n, 1, ts), jnp.int32),
        ),
        grid_spec=pltpu.PrefetchScalarGridSpec(
            num_scalar_prefetch=0,
            grid=(n, n_s_tiles),
            in_specs=[
                pl.BlockSpec((1, c, ts), lambda b, si: (b, 0, si)),
                pl.BlockSpec((1, 1, ts), lambda b, si: (b, 0, si)),
            ],
            out_specs=[
                pl.BlockSpec((1, 1, ts), lambda b, si: (b, 0, 0)),
                pl.BlockSpec((1, 1, ts), lambda b, si: (b, 0, 0)),
            ],
        ),
        compiler_params=pltpu.CompilerParams(
            dimension_semantics=("parallel", "arbitrary"),
            vmem_limit_bytes=32 * 1024 * 1024,
        ),
    )(logits_ncs, target_n1s)

    # Final scalar: sum(loss) / (numel - num_masked).  Count kept exact (int32).
    total = jnp.sum(sum_out)
    count = jnp.sum(cnt_out).astype(jnp.float32)
    return (total / count).astype(jnp.float32)


def _reference(logits_nchw, target_nhw):
    # Pure-JAX reference mirroring the PyTorch module.
    n, c, h, w = logits_nchw.shape
    logits = jnp.transpose(logits_nchw, (0, 2, 3, 1)).reshape(-1, c)
    tgt = target_nhw.reshape(-1).astype(jnp.int32)
    mask = tgt == MASK_VAL
    t_eff = jnp.where(mask, 0, tgt)
    lse = jax.scipy.special.logsumexp(logits, axis=-1)
    ce = lse - jnp.take_along_axis(logits, t_eff[:, None], axis=-1)[:, 0]
    ce = jnp.where(mask, 0.0, ce)
    return ce.sum() / (ce.size - mask.sum())


if __name__ == "__main__":
    key = jax.random.PRNGKey(0)
    k1, k2, k3 = jax.random.split(key, 3)

    N, C, H, W = 2, 4, 16, 16
    logits = jax.random.normal(k1, (N, C, H, W), dtype=jnp.float32)
    target = jax.random.randint(k2, (N, H, W), 0, C, dtype=jnp.int32)
    # mark ~20% of pixels as ignored (label 255)
    ignore = jax.random.bernoulli(k3, 0.2, (N, H, W))
    target = jnp.where(ignore, MASK_VAL, target)

    loss = masked_cross_entropy_loss(logits, target)
    loss = jax.block_until_ready(loss)

    ref = jax.block_until_ready(_reference(logits, target))
    assert jnp.allclose(loss, ref, rtol=1e-5, atol=1e-5), (loss, ref)

    print("KERNEL_OK")
</pallas_src>

<mosaic_0001>
module attributes {stable_mosaic.version = 11 : i64} {
  func.func @_masked_ce_kernel(%arg0: i32, %arg1: i32, %arg2: memref<1x4x256xf32, #tpu.memory_space<vmem>>, %arg3: memref<1x1x256xi32, #tpu.memory_space<vmem>>, %arg4: memref<1x1x256xf32, #tpu.memory_space<vmem>>, %arg5: memref<1x1x256xi32, #tpu.memory_space<vmem>>) attributes {dimension_semantics = [#tpu.dimension_semantics<parallel>, #tpu.dimension_semantics<arbitrary>], iteration_bounds = array<i64: 2, 1>, scalar_prefetch = 0 : i64, scratch_operands = 0 : i64, tpu.core_type = #tpu.core_type<tc>, window_params = [{transform_indices = @transform_0, window_bounds = array<i64: 1, 4, 256>}, {transform_indices = @transform_1, window_bounds = array<i64: 1, 1, 256>}, {transform_indices = @transform_2, window_bounds = array<i64: 1, 1, 256>}, {transform_indices = @transform_3, window_bounds = array<i64: 1, 1, 256>}]} {
    %c0_i32 = arith.constant 0 : i32
    %0 = arith.cmpi eq, %arg1, %c0_i32 : i32
    %1 = arith.extui %0 : i1 to i32
    %c0_i32_0 = arith.constant 0 : i32
    %2 = arith.cmpi ne, %1, %c0_i32_0 : i32
    scf.if %2 {
      %cst_23 = arith.constant 0.000000e+00 : f32
      %35 = vector.broadcast %cst_23 : f32 to vector<1x1x256xf32>
      %c0_24 = arith.constant 0 : index
      %c0_25 = arith.constant 0 : index
      %c0_26 = arith.constant 0 : index
      %36 = vector.load %arg4[%c0_24, %c0_25, %c0_26] : memref<1x1x256xf32, #tpu.memory_space<vmem>>, vector<1x1x256xf32>
      tpu.vector_store %arg4[%c0_24, %c0_25, %c0_26], %35 {strides = array<i32>} : memref<1x1x256xf32, #tpu.memory_space<vmem>>, vector<1x1x256xf32>,
      %c0_i32_27 = arith.constant 0 : i32
      %37 = vector.broadcast %c0_i32_27 : i32 to vector<1x1x256xi32>
      %c0_28 = arith.constant 0 : index
      %c0_29 = arith.constant 0 : index
      %c0_30 = arith.constant 0 : index
      %38 = vector.load %arg5[%c0_28, %c0_29, %c0_30] : memref<1x1x256xi32, #tpu.memory_space<vmem>>, vector<1x1x256xi32>
      tpu.vector_store %arg5[%c0_28, %c0_29, %c0_30], %37 {strides = array<i32>} : memref<1x1x256xi32, #tpu.memory_space<vmem>>, vector<1x1x256xi32>,
    } else {
    }
    %c0 = arith.constant 0 : index
    %c0_1 = arith.constant 0 : index
    %c0_2 = arith.constant 0 : index
    %3 = vector.load %arg2[%c0, %c0_1, %c0_2] : memref<1x4x256xf32, #tpu.memory_space<vmem>>, vector<1x4x256xf32>
    %c0_3 = arith.constant 0 : index
    %c0_4 = arith.constant 0 : index
    %c0_5 = arith.constant 0 : index
    %4 = vector.load %arg3[%c0_3, %c0_4, %c0_5] : memref<1x1x256xi32, #tpu.memory_space<vmem>>, vector<1x1x256xi32>
    %c255_i32 = arith.constant 255 : i32
    %5 = vector.broadcast %c255_i32 : i32 to vector<1x1x256xi32>
    %6 = arith.cmpi ne, %4, %5 : vector<1x1x256xi32>
    %c0_i32_6 = arith.constant 0 : i32
    %7 = vector.broadcast %c0_i32_6 : i32 to vector<1x1x256xi32>
    %8 = arith.select %6, %4, %7 : vector<1x1x256xi1>, vector<1x1x256xi32>
    %cst = arith.constant dense<0xFF800000> : vector<1x256xf32>
    %9 = vector.multi_reduction <maximumf>, %3, %cst [1] : vector<1x4x256xf32> to vector<1x256xf32>
    %10 = vector.shape_cast %9 : vector<1x256xf32> to vector<1x1x256xf32>
    %11 = vector.broadcast %10 : vector<1x1x256xf32> to vector<1x4x256xf32>
    %12 = arith.subf %3, %11 : vector<1x4x256xf32>
    %13 = math.exp %12 : vector<1x4x256xf32>
    %cst_7 = arith.constant dense<0.000000e+00> : vector<1x256xf32>
    %14 = vector.multi_reduction <add>, %13, %cst_7 [1] : vector<1x4x256xf32> to vector<1x256xf32>
    %15 = vector.shape_cast %14 : vector<1x256xf32> to vector<1x1x256xf32>
    %16 = math.log %15 : vector<1x1x256xf32>
    %17 = arith.addf %10, %16 : vector<1x1x256xf32>
    %18 = tpu.iota {dimensions = array<i32: 1>} : vector<1x4x256xi32>
    %19 = vector.broadcast %8 : vector<1x1x256xi32> to vector<1x4x256xi32>
    %20 = arith.cmpi eq, %18, %19 : vector<1x4x256xi32>
    %cst_8 = arith.constant 0.000000e+00 : f32
    %21 = vector.broadcast %cst_8 : f32 to vector<1x4x256xf32>
    %22 = arith.select %20, %3, %21 : vector<1x4x256xi1>, vector<1x4x256xf32>
    %cst_9 = arith.constant dense<0.000000e+00> : vector<1x256xf32>
    %23 = vector.multi_reduction <add>, %22, %cst_9 [1] : vector<1x4x256xf32> to vector<1x256xf32>
    %24 = vector.shape_cast %23 : vector<1x256xf32> to vector<1x1x256xf32>
    %25 = arith.subf %17, %24 : vector<1x1x256xf32>
    %cst_10 = arith.constant 0.000000e+00 : f32
    %26 = vector.broadcast %cst_10 : f32 to vector<1x1x256xf32>
    %27 = arith.select %6, %25, %26 : vector<1x1x256xi1>, vector<1x1x256xf32>
    %c0_11 = arith.constant 0 : index
    %c0_12 = arith.constant 0 : index
    %c0_13 = arith.constant 0 : index
    %28 = vector.load %arg4[%c0_11, %c0_12, %c0_13] : memref<1x1x256xf32, #tpu.memory_space<vmem>>, vector<1x1x256xf32>
    %29 = arith.addf %28, %27 : vector<1x1x256xf32>
    %c0_14 = arith.constant 0 : index
    %c0_15 = arith.constant 0 : index
    %c0_16 = arith.constant 0 : index
    %30 = vector.load %arg4[%c0_14, %c0_15, %c0_16] : memref<1x1x256xf32, #tpu.memory_space<vmem>>, vector<1x1x256xf32>
    tpu.vector_store %arg4[%c0_14, %c0_15, %c0_16], %29 {strides = array<i32>} : memref<1x1x256xf32, #tpu.memory_space<vmem>>, vector<1x1x256xf32>,
    %c0_17 = arith.constant 0 : index
    %c0_18 = arith.constant 0 : index
    %c0_19 = arith.constant 0 : index
    %31 = vector.load %arg5[%c0_17, %c0_18, %c0_19] : memref<1x1x256xi32, #tpu.memory_space<vmem>>, vector<1x1x256xi32>
    %32 = arith.extui %6 : vector<1x1x256xi1> to vector<1x1x256xi32>
    %33 = arith.addi %31, %32 : vector<1x1x256xi32>
    %c0_20 = arith.constant 0 : index
    %c0_21 = arith.constant 0 : index
    %c0_22 = arith.constant 0 : index
    %34 = vector.load %arg5[%c0_20, %c0_21, %c0_22] : memref<1x1x256xi32, #tpu.memory_space<vmem>>, vector<1x1x256xi32>
    tpu.vector_store %arg5[%c0_20, %c0_21, %c0_22], %33 {strides = array<i32>} : memref<1x1x256xi32, #tpu.memory_space<vmem>>, vector<1x1x256xi32>,
    return
  }
  func.func @transform_0(%arg0: i32, %arg1: i32) -> (i32, i32, i32) {
    %c0_i32 = arith.constant 0 : i32
    %c0_i32_0 = arith.constant 0 : i32
    return %arg0, %c0_i32, %arg1 : i32, i32, i32
  }
  func.func @transform_1(%arg0: i32, %arg1: i32) -> (i32, i32, i32) {
    %c0_i32 = arith.constant 0 : i32
    %c0_i32_0 = arith.constant 0 : i32
    return %arg0, %c0_i32, %arg1 : i32, i32, i32
  }
  func.func @transform_2(%arg0: i32, %arg1: i32) -> (i32, i32, i32) {
    %c0_i32 = arith.constant 0 : i32
    %c0_i32_0 = arith.constant 0 : i32
    %c0_i32_1 = arith.constant 0 : i32
    return %arg0, %c0_i32, %c0_i32_0 : i32, i32, i32
  }
  func.func @transform_3(%arg0: i32, %arg1: i32) -> (i32, i32, i32) {
    %c0_i32 = arith.constant 0 : i32
    %c0_i32_0 = arith.constant 0 : i32
    %c0_i32_1 = arith.constant 0 : i32
    return %arg0, %c0_i32, %c0_i32_0 : i32, i32, i32
  }
}

</mosaic_0001>

<bundles_post_ra>
// kernel: tpu_custom_call.1
= control target key start
LH: loop header
LB: loop body
LE: loop exit
PB: predicated region body
PF: predicated region fallthrough
CT: control target
= control target key end

     0   :  { %9 = vsyncpa [#allocation3], 0  ;;  %s1060_s0 = inlined_call_operand.hbm [shape: f32[2,4,256], index: 0, kind: input, shape index: {}]   ;;  %s1061_s1 = inlined_call_operand.hbm [shape: s32[2,1,256], index: 1, kind: input, shape index: {}]   ;;  %s1062_s2 = inlined_call_operand.hbm [shape: f32[2,1,256], index: 2, kind: output, shape index: {0}]   ;;  %s1063_s3 = inlined_call_operand.hbm [shape: s32[2,1,256], index: 3, kind: output, shape index: {1}]  }
   0x1   :  { %11 = vsyncpa [#allocation3 + $0x1], 0 }
   0x2   :  { %12 = vsyncpa [#allocation6], 0 }
   0x3   :  { %14 = vsyncpa [#allocation6 + $0x1], 0 }
   0x4   :  { %15 = vsyncpa [#allocation4], 0 }
   0x5   :  { %17 = vsyncpa [#allocation4 + $0x1], 0 }
   0x6   :  { %18 = vsyncpa [#allocation9], 0 }
   0x7   :  { %20 = vsyncpa [#allocation9 + $0x1], 0  ;;  %s854_s12 = smov 0   ;;  %s856_s13 = smov 0  }
   0x8   :  { %s858_s14 = smov 0   ;;  %s860_s15 = smov 0  }
   0x9   :  { %s862_s16 = smov 0   ;;  %s864_s17 = smov 0  }
   0xa LB: > { %s551_s18 = sadd.s32 4294967295, %s830_s17   ;;  %s552_s19 = sadd.s32 4294967294, %s830_s17   ;;  %s830_s17 = sphi %s864_s17, %s26_s17   ;;  %s826_s16 = sphi %s862_s16, %s1075_s16   ;;  %s822_s15 = sphi %s860_s15, %s1074_s15   ;;  %s818_s14 = sphi %s858_s14, %s1073_s14   ;;  %s814_s13 = sphi %s856_s13, %s1072_s13   ;;  %s810_s12 = sphi %s854_s12, %s1071_s12  }
   0xb   : > { %s38_s20 = sadd.s32 1, %s826_s16  ;;  %s47_s21 = sadd.s32 1, %s818_s14 }
   0xc   : > { %p40_p0 = scmp.ge.s32.totalorder %s38_s20, 2  ;;  %p54_p1 = scmp.ne.s32.totalorder %s818_s14, %s814_s13 }
   0xd   : > { %p55_p2 = scmp.eq.s32.totalorder %s830_s17, 0  ;;  %p60_p3 = scmp.ne.s32.totalorder %s814_s13, %s810_s12 }
   0xe   : > { %s1077_s20 = smov (%p40_p0, %s38_s20), 0  ;;  %p61_p5 = scmp.eq.s32.totalorder %s551_s18, 0 }
   0xf   : > { %p895_p4 = por %p55_p2, %p54_p1  ;;  %s42_s23 = ssub.s32 %s826_s16, %s1077_s20 }
  0x10   : > { %p112_p6 = scmp.eq.s32.totalorder %s551_s18, 1  ;;  %p45_p7 = scmp.eq.s32.totalorder %s42_s23, 0 }
  0x11   : > { %p901_p8 = por %p61_p5, %p60_p3  ;;  %p118_p10 = scmp.eq.s32.totalorder %s552_s19, 1 }
  0x12   : > { %p905_p9 = por %p112_p6, %p54_p1  ;;  %p554_p12 = scmp.ge.s32.totalorder %s830_s17, 2 }
  0x13   : > { %s910_s26 = scalar_select %p45_p7, %s818_s14, %s47_s21  }
  0x14   : > { %p912_p11 = por %p118_p10, %p60_p3  ;;  %p594_p13 = scmp.lt.s32.totalorder %s830_s17, 2 }
  0x15   : > { %s164_s28 = sand.u32 1, %s818_s14   ;;  %s571_s30 = sshll.u32 %s826_s16, 3 }
  0x16   : > { %s555_s29 = sshll.u32 %s164_s28, 3  ;;  %s175_s6 = scalar_lea.hbm %s1060_s0, %s571_s30 }
  0x17   : > { %s168_s7 = scalar_lea.vmem [#allocation2], %s555_s29  ;;  %s177_s9 = sshll.u32 %s175_s6, 4  ;;  %s178_s9 = int_to_ptr.hbm [resolvable:$true] %s177_s9 }
  0x18   : > { %s179_s8 = sshll.u32 %s168_s7, 4  ;;  %p925_p0 = pnand %p594_p13, %p895_p4  ;;  %s180_s8 = int_to_ptr.vmem [resolvable:$true] %s179_s8 }
  0x19   : > { %p560_p1 = scmp.ge.s32.totalorder %s830_s17, 1  ;;  %p205_p2 = scmp.lt.s32.totalorder %s830_s17, 3 }
  0x1a   : > { %s165_s11 = scalar_lea.sflag [#allocation3], %s164_s28  ;;  %s558_s18 = sshll.u32 %s164_s28, 1 }
  0x1b   : > { %583 = dma.hbm_to_vmem [thread:$0]  (!%p925_p0), %s178_s9, 128, %s180_s8, %s165_s11  }
  0x1c   : > { %p206_p3 = pnand %p560_p1, %p205_p2  ;;  %s559_s19 = sshll.u32 %s826_s16, 1 }
  0x1d   : > { %s196_s29 = scalar_lea.hbm %s1061_s1, %s559_s19  ;;  %s190_s30 = scalar_lea.vmem [#allocation5], %s558_s18 }
  0x1e   : > { %s200_s22 = sshll.u32 %s190_s30, 4  ;;  %s198_s4 = sshll.u32 %s196_s29, 4  ;;  %s201_s22 = int_to_ptr.vmem [resolvable:$true] %s200_s22  ;;  %s199_s4 = int_to_ptr.hbm [resolvable:$true] %s198_s4 }
  0x1f   : > { %s187_s5 = scalar_lea.sflag [#allocation6], %s164_s28  ;;  %209 = sbr.rel (%p206_p3) target bundleno = 120 (0x78), region = 28 }
  0x20   : > { %586 = dma.hbm_to_vmem [thread:$0]  (!%p925_p0), %s199_s4, 32, %s201_s22, %s187_s5  }
  0x21   : > { %s940_s6 = sand.u32 (!%p206_p3), 1, %s814_s13  }
  0x22   : > { %s561_s7 = sshll.u32 (!%p206_p3), %s940_s6, 3  ;;  %s212_s8 = scalar_lea.sflag (!%p206_p3), [#allocation3], %s940_s6 }
  0x23   : > { %s215_s9 = scalar_lea.vmem (!%p206_p3), [#allocation2], %s561_s7 }
  0x24   : > { %793 = dma.done.wait (%p901_p8), %s212_s8, 128  }
  0x25   : > { %795 = vsyncadd (%p901_p8), %s212_s8, 4294967168  ;;  %s949_s28 = sshll.u32 %s940_s6, 1  ;;  %s222_s10 = scalar_lea.sflag [#allocation6], %s940_s6 }
  0x26   : > { %s225_s11 = scalar_lea.vmem [#allocation5], %s949_s28 }
  0x27   : > { %797 = dma.done.wait (%p901_p8), %s222_s10, 32  }
  0x28   : > { %799 = vsyncadd (%p901_p8), %s222_s10, 4294967264  ;;  %v271_v0 = vld [vmem:[%s215_s9] sm:$0xff]  ;;  %vm281_vm0 = vcmask 1043456   ;;  %v265_v19 = vlaneseq  ;;  %s971_s24 = scalar_lea.vmem [#allocation7], %s949_s28  ;;  %v832_v23 = vmov 0.0   ;;  %s258_s18 = scalar_lea.vmem [#allocation8], %s949_s28 }
  0x29   : > { %276 = vst [vmem:[#allocation1] ss:$2 sm:$0xff] %v271_v0  ;;  %v833_v24 = vmov 0   ;;  %s567_s19 = sshll.u32 %s822_s15, 1  ;;  %v982_v26 = vld [vmem:[%s225_s11] sm:$0x3] }
  0x2a   : > { %vm966_vm1 = vcmp.lt.s32.totalorder %v265_v19, 256  ;;  %s407_s29 = scalar_lea.hbm %s1063_s3, %s567_s19  ;;  %vm273_vm2 = vcmp.ne.s32.totalorder %v982_v26, 255  ;;  %s409_s30 = sshll.u32 %s258_s18, 4  ;;  %v331_v35 = vshrl.u32 %v265_v19, 7  ;;  %s410_s30 = int_to_ptr.vmem [resolvable:$true] %s409_s30 }
  0x2b   : > { %269 = vst.msk [vmem:[%s971_s24] sm:$0x3] %vm966_vm1, %v832_v23  ;;  %s411_s22 = sshll.u32 %s407_s29, 4  ;;  %v274_v27 = vsel %vm273_vm2, %v982_v26, 0  ;;  %v374_v29 = vsel %vm273_vm2, 1, %v833_v24  ;;  %s383_s4 = scalar_lea.sflag [#allocation9], %s940_s6  ;;  %s412_s22 = int_to_ptr.hbm [resolvable:$true] %s411_s22 }
  0x2c   : > { %270 = vst.msk [vmem:[%s258_s18] sm:$0x3] %vm966_vm1, %v833_v24  ;;  %v332_v38 = vperm.slane %v274_v27, 0  ;;  %v333_v39 = vperm.slane %v274_v27, 1  ;;  %s726_s5 = sshra.s32 %s412_s22, 4  ;;  %s732_s28 = scalar_lea.hbm %s1063_s3, 4  ;;  %s727_s5 = int_to_ptr.hbm [resolvable:$true] %s726_s5 }
  0x2d   : > { %s728_s7 = scalar_lea.hbm %s727_s5, 2  ;;  %p733_p7 = scmp.lt.s32.totalorder %s727_s5, %s1063_s3 }
  0x2e   : > { %p729_p4 = scmp.ne.s32.totalorder %s727_s5, %s728_s7  ;;  %p734_p8 = scmp.lt.s32.totalorder %s732_s28, %s728_s7 }
  0x30   : > { %v277_v1 = vld.sshfl [vmem:[#allocation1] sm:$0xff pattern:$0x75316420]  ;;  %v278_v2 = vld.sshfl [vmem:[#allocation1 + $0x8] sm:$0xff pattern:$0x75316420]  ;;  %p730_p5 = pnand %p729_p4, %p905_p9  ;;  %p735_p10 = por %p734_p8, %p733_p7 }
  0x31   : > { %v282_v3 = vsel %vm281_vm0, %v277_v1, -inf  ;;  %v289_v4 = vsel %vm281_vm0, %v278_v2, -inf }
  0x32   : > { %v283_v5 = vrot.slane %v282_v3, 4  ;;  %v290_v6 = vrot.slane %v289_v4, 4  ;;  %p731_p6 = pneg %p730_p5 }
  0x33   : > { %v373_v28 = vld [vmem:[%s258_s18] sm:$0x3] }
  0x34   : > { %v284_v7 = vmax.f32 %v282_v3, %v283_v5  ;;  %v291_v8 = vmax.f32 %v289_v4, %v290_v6  ;;  %v375_v32 = vadd.s32 %v374_v29, %v373_v28  ;;  %p736_p13 = pnand %p735_p10, %p731_p6 }
  0x36   : > { %v285_v9 = vrot.slane %v284_v7, 2  ;;  %v292_v10 = vrot.slane %v291_v8, 2  ;;  %376 = vst.msk [vmem:[%s258_s18] sm:$0x3] %vm966_vm1, %v375_v32 }
  0x38   : > { %v286_v11 = vmax.f32 %v284_v7, %v285_v9  ;;  %v293_v12 = vmax.f32 %v291_v8, %v292_v10 }
  0x3a   : > { %v287_v13 = vrot.slane %v286_v11, 1  ;;  %v294_v14 = vrot.slane %v293_v12, 1 }
  0x3c   : > { %v959_v15 = vmax.f32 %v293_v12, %v294_v14  ;;  %v961_v16 = vmax.f32 %v286_v11, %v287_v13 }
  0x3e   : > { %v298_v17 = vrot.slane %v959_v15, 4 }
  0x40   : > { %v299_v18 = vsel %vm281_vm0, %v961_v16, %v298_v17 }
  0x41   : > { %v301_v20 = vsub.f32 %v271_v0, %v299_v18 }
  0x43   : > { %v302_v22 = vmul.f32 1.442695, %v301_v20 }
  0x45   : > { %646 = vpow2.f32 %v302_v22 }
  0x4b   : > { %v647_v25 = vpop.eup %646 }
  0x4c   : > { %305 = vst [vmem:[#allocation1] ss:$2 sm:$0xff] %v647_v25 }
  0x53   : > { %v306_v30 = vld.sshfl [vmem:[#allocation1] sm:$0xff pattern:$0x75316420]  ;;  %v307_v31 = vld.sshfl [vmem:[#allocation1 + $0x8] sm:$0xff pattern:$0x75316420] }
  0x54   : > { %v310_v33 = vsel %vm281_vm0, %v306_v30, 0.0  ;;  %v317_v34 = vsel %vm281_vm0, %v307_v31, 0.0  ;;  %336 = vst [vmem:[#allocation1] ss:$2 sm:$0xff] %v271_v0 }
  0x55   : > { %v311_v36 = vrot.slane %v310_v33, 4  ;;  %v318_v37 = vrot.slane %v317_v34, 4 }
  0x56   : > { %739 = shalt.err (!%p736_p13)
}
  0x57   : > { %577 = dma.vmem_to_hbm [thread:$0]  (%p905_p9), %s410_s30, 32, %s412_s22, %s383_s4   ;;  %v312_v40 = vadd.f32 %v311_v36, %v310_v33  ;;  %v319_v41 = vadd.f32 %v318_v37, %v317_v34  ;;  %vm334_vm3 = vcmp.eq.s32.totalorder %v331_v35, %v332_v38  ;;  %vm335_vm4 = vcmp.eq.s32.totalorder %v331_v35, %v333_v39  ;;  %v366_v13 = vld [vmem:[%s971_s24] sm:$0x3] }
  0x58   : > { %s393_s23 = scalar_lea.hbm %s1062_s2, %s567_s19  ;;  %vm362_vm5 = vcmask 1040384   ;;  %s395_s29 = sshll.u32 %s971_s24, 4  ;;  %s396_s29 = int_to_ptr.vmem [resolvable:$true] %s395_s29 }
  0x59   : > { %v313_v42 = vrot.slane %v312_v40, 2  ;;  %v320_v43 = vrot.slane %v319_v41, 2  ;;  %s397_s30 = sshll.u32 %s393_s23, 4  ;;  %s378_s15 = scalar_lea.sflag [#allocation4], %s940_s6  ;;  %s398_s30 = int_to_ptr.hbm [resolvable:$true] %s397_s30 }
  0x5a   : > { %s754_s22 = sshra.s32 %s398_s30, 4  ;;  %s760_s7 = scalar_lea.hbm %s1062_s2, 4  ;;  %s755_s22 = int_to_ptr.hbm [resolvable:$true] %s754_s22 }
  0x5b   : > { %v314_v44 = vadd.f32 %v313_v42, %v312_v40  ;;  %v321_v45 = vadd.f32 %v320_v43, %v319_v41  ;;  %v337_v46 = vld.sshfl [vmem:[#allocation1] sm:$0xff pattern:$0x75316420]  ;;  %v338_v47 = vld.sshfl [vmem:[#allocation1 + $0x8] sm:$0xff pattern:$0x75316420]  ;;  %p761_p3 = scmp.lt.s32.totalorder %s755_s22, %s1062_s2 }
  0x5c   : > { %v341_v48 = vsel %vm334_vm3, %v337_v46, 0.0  ;;  %v342_v49 = vsel %vm335_vm4, %v338_v47, 0.0  ;;  %s756_s19 = scalar_lea.hbm %s755_s22, 2 }
  0x5d   : > { %v315_v50 = vrot.slane %v314_v44, 1  ;;  %v322_v51 = vrot.slane %v321_v45, 1  ;;  %v343_v52 = vsel %vm281_vm0, %v341_v48, 0.0  ;;  %v350_v53 = vsel %vm281_vm0, %v342_v49, 0.0  ;;  %p757_p0 = scmp.ne.s32.totalorder %s755_s22, %s756_s19  ;;  %p762_p4 = scmp.lt.s32.totalorder %s760_s7, %s756_s19 }
  0x5e   : > { %v344_v54 = vrot.slane %v343_v52, 4  ;;  %v351_v55 = vrot.slane %v350_v53, 4 }
  0x5f   : > { %v316_v56 = vadd.f32 %v315_v50, %v314_v44  ;;  %v323_v57 = vadd.f32 %v322_v51, %v321_v45  ;;  %p758_p1 = pnand %p757_p0, %p905_p9  ;;  %p763_p5 = por %p762_p4, %p761_p3 }
  0x60   : > { %v345_v58 = vadd.f32 %v344_v54, %v343_v52  ;;  %v352_v59 = vadd.f32 %v351_v55, %v350_v53 }
  0x61   : > { %648 = vlog2.f32 %v316_v56  ;;  %p759_p2 = pneg %p758_p1 }
  0x62   : > { %650 = vlog2.f32 %v323_v57  ;;  %v346_v60 = vrot.slane %v345_v58, 2  ;;  %v353_v61 = vrot.slane %v352_v59, 2 }
  0x63   : > { %p764_p6 = pnand %p763_p5, %p759_p2 }
  0x64   : > { %v354_v62 = vadd.f32 %v353_v61, %v352_v59  ;;  %v347_v63 = vadd.f32 %v346_v60, %v345_v58 }
  0x66   : > { %v355_v1 = vrot.slane %v354_v62, 1  ;;  %v348_v5 = vrot.slane %v347_v63, 1 }
  0x67   : > { %v649_v0 = vpop.eup %648 }
  0x68   : > { %v651_v2 = vpop.eup %650  ;;  %v325_v3 = vmul.f32 0.6931472, %v649_v0  ;;  %v356_v8 = vadd.f32 %v355_v1, %v354_v62  ;;  %v349_v9 = vadd.f32 %v348_v5, %v347_v63 }
  0x69   : > { %v327_v4 = vmul.f32 0.6931472, %v651_v2 }
  0x6a   : > { %v328_v6 = vadd.f32 %v325_v3, %v961_v16 }
  0x6b   : > { %v329_v7 = vadd.f32 %v327_v4, %v959_v15 }
  0x6c   : > { %v357_v11 = vsub.f32 %v328_v6, %v349_v9 }
  0x6d   : > { %v358_v10 = vsub.f32 %v329_v7, %v356_v8 }
  0x6f   : > { %v361_v12 = vrot.slane %v358_v10, 7 }
  0x71   : > { %v363_v14 = vsel %vm362_vm5, %v357_v11, %v361_v12 }
  0x72   : > { %v365_v15 = vsel %vm273_vm2, %v363_v14, 0.0 }
  0x73   : > { %v367_v16 = vadd.f32 %v366_v13, %v365_v15 }
  0x75   : > { %372 = vst.msk [vmem:[%s971_s24] sm:$0x3] %vm966_vm1, %v367_v16 }
  0x76   : > { %767 = shalt.err (!%p764_p6)
}
  0x77   : > { %576 = dma.vmem_to_hbm [thread:$0]  (%p905_p9), %s396_s29, 32, %s398_s30, %s378_s15  }
  0x78 PF: > { %s423_s6 = sand.u32 1, %s810_s12   ;;  %p588_p7 = pnand %p554_p12, %p912_p11 }
  0x79   : > { %s424_s24 = scalar_lea.sflag [#allocation4], %s423_s6 }
  0x7a   : > { %p589_p8 = pneg %p588_p7 }
  0x7c   : > { %801 = dma.done.wait (%p589_p8), %s424_s24, 32  }
  0x7d   : > { %803 = vsyncadd (%p589_p8), %s424_s24, 4294967264  ;;  %s434_s28 = scalar_lea.sflag [#allocation9], %s423_s6 }
  0x7e   : > { %805 = dma.done.wait (%p589_p8), %s434_s28, 32  }
  0x7f   : > { %807 = vsyncadd (%p589_p8), %s434_s28, 4294967264  ;;  %s26_s17 = sadd.s32 1, %s830_s17   ;;  %s1071_s12 = smov %s814_s13 }
  0x80   : > { %p23_p10 = scmp.ge.s32.totalorder %s26_s17, 4   ;;  %s1072_s13 = smov %s818_s14 }
  0x81   : > { %s1073_s14 = smov %s910_s26  ;;  %s1074_s15 = smov %s826_s16 }
  0x82   : > { %s1075_s16 = smov %s1077_s20  ;;  %25 = sbr.rel (!%p23_p10) target bundleno = 10 (0xa), region = 107 }
  0x87   :  { %440 = vsyncpa [#allocation3], 1 }
  0x88   :  { %442 = vsyncpa [#allocation3 + $0x1], 1 }
  0x89   :  { %443 = vsyncpa [#allocation6], 1 }
  0x8a   :  { %445 = vsyncpa [#allocation6 + $0x1], 1 }
  0x8b   :  { %446 = vsyncpa [#allocation4], 1 }
  0x8c   :  { %448 = vsyncpa [#allocation4 + $0x1], 1 }
  0x8d   :  { %449 = vsyncpa [#allocation9], 1 }
  0x8e   :  { %451 = vsyncpa [#allocation9 + $0x1], 1 }

</bundles_post_ra>
